<compile_context>
chip_gen: v7x
topology: tpu7x:2x2x1
jax: 0.10.0
libtpu: 0.0.40
codegen_flags: <defaults>
</compile_context>

<pallas_src>
import jax
import jax.numpy as jnp
from jax.experimental import pallas as pl
from jax.experimental.pallas import tpu as pltpu


_MAX_BLOCK_ELEMS = 256 * 1024        # per-array per-grid-step element budget
_LANE_CANDIDATES = (512, 256, 128)   # lane width for the dense slab layout
_MIN_GRID_STEPS = 4                  # keep both v7x TensorCores busy


def _round_up(v: int, m: int) -> int:
    return ((v + m - 1) // m) * m


def _unpool_kernel(orig_ref, x_ref, out_ref):
    orig = orig_ref[...]
    x = x_ref[...]
    # where(orig >= x, x, 0) == (orig >= x).float() * x : one VPU select.
    out_ref[...] = jnp.where(orig >= x, x, jnp.zeros_like(x)).astype(out_ref.dtype)


def _unpool_dense(inp, n, c, hw, lanes, max_block_elems):
    """Main path (hw % lanes == 0): dense slabs, no channel-slice copy."""
    rows = hw // lanes
    itemsize = jnp.dtype(inp.dtype).itemsize

    # Row-tile: multiple of 8 (or full extent), capped by the VMEM budget.
    max_tr = max(8, (max_block_elems // lanes) // 8 * 8)
    tr = rows if rows <= max_tr else max_tr
    num_tiles = pl.cdiv(rows, tr)

    # Guarantee a handful of grid steps so v7x's second core has work.
    if n * num_tiles < _MIN_GRID_STEPS and rows > 8:
        tiles_wanted = min(pl.cdiv(_MIN_GRID_STEPS, n), pl.cdiv(rows, 8))
        tr = max(8, _round_up(pl.cdiv(rows, tiles_wanted), 8))
        if tr >= rows:
            tr = rows
        num_tiles = pl.cdiv(rows, tr)

    # Free reshape of the contiguous input; the two in_specs below index the
    # channel-0 and channel-1 rows of each batch directly, so only the bytes
    # the kernel actually needs are streamed from HBM.
    flat = inp.reshape(n * c, rows, lanes)

    out = pl.pallas_call(
        _unpool_kernel,
        out_shape=jax.ShapeDtypeStruct((n, rows, lanes), inp.dtype),
        grid_spec=pl.GridSpec(
            grid=(n, num_tiles),
            in_specs=[
                pl.BlockSpec((1, tr, lanes), lambda b, t: (b * c, t, 0)),      # orig
                pl.BlockSpec((1, tr, lanes), lambda b, t: (b * c + 1, t, 0)),  # x
            ],
            out_specs=pl.BlockSpec((1, tr, lanes), lambda b, t: (b, t, 0)),
        ),
        compiler_params=pltpu.CompilerParams(
            dimension_semantics=("parallel", "parallel"),
        ),
        cost_estimate=pl.CostEstimate(
            flops=2 * n * hw,
            transcendentals=0,
            bytes_accessed=3 * n * hw * itemsize,
        ),
    )(flat, flat)
    return out.reshape(n, hw)


def _unpool_fallback(inp, n, c, hw, max_block_elems):
    """hw not a multiple of 128: simple lane-tiled path (channels sliced)."""
    itemsize = jnp.dtype(inp.dtype).itemsize
    flat = inp.reshape(n, c, hw)
    orig = flat[:, 0:1, :]
    x = flat[:, 1:2, :]

    cap = max(128, (max_block_elems // 128) * 128)
    tw = hw if hw <= cap else cap          # full extent, or 128-aligned tiles
    num_tiles = pl.cdiv(hw, tw)

    out = pl.pallas_call(
        _unpool_kernel,
        out_shape=jax.ShapeDtypeStruct((n, 1, hw), inp.dtype),
        grid_spec=pl.GridSpec(
            grid=(n, num_tiles),
            in_specs=[
                pl.BlockSpec((1, 1, tw), lambda b, t: (b, 0, t)),
                pl.BlockSpec((1, 1, tw), lambda b, t: (b, 0, t)),
            ],
            out_specs=pl.BlockSpec((1, 1, tw), lambda b, t: (b, 0, t)),
        ),
        compiler_params=pltpu.CompilerParams(
            dimension_semantics=("parallel", "parallel"),
        ),
        cost_estimate=pl.CostEstimate(
            flops=2 * n * hw,
            transcendentals=0,
            bytes_accessed=3 * n * hw * itemsize,
        ),
    )(orig, x)
    return out.reshape(n, hw)


def unpool(inp: jax.Array, *, max_block_elems: int = _MAX_BLOCK_ELEMS) -> jax.Array:
    """inp: (N, C>=2, H, W) -> (N, H, W); out = where(inp[:,0] >= inp[:,1], inp[:,1], 0)."""
    n, c, h, w = inp.shape
    assert c >= 2, "Unpool expects at least 2 entries along dim 1"
    hw = h * w

    # Pick a lane width: prefer one that also yields >= 8 sublane rows,
    # otherwise the smallest dividing candidate (maximizes sublane fill).
    lanes = None
    for cand in _LANE_CANDIDATES:
        if hw % cand == 0 and hw // cand >= 8:
            lanes = cand
            break
    if lanes is None:
        for cand in reversed(_LANE_CANDIDATES):
            if hw % cand == 0:
                lanes = cand
                break

    if lanes is not None:
        out = _unpool_dense(inp, n, c, hw, lanes, max_block_elems)
    else:
        # TODO(synk): hw not a multiple of 128 uses a channel-sliced,
        # lane-masked fallback instead of in-kernel padding.
        out = _unpool_fallback(inp, n, c, hw, max_block_elems)
    return out.reshape(n, h, w)


def unpool_ref(inp: jax.Array) -> jax.Array:
    orig = inp[:, 0]
    x = inp[:, 1]
    mask = (orig >= x).astype(jnp.float32)
    return (mask * x).astype(inp.dtype)


if __name__ == "__main__":
    key = jax.random.PRNGKey(0)
    k1, k2 = jax.random.split(key)

    # Primary case: (N=2, C=4, H=16, W=16); only channels 0 and 1 are used.
    x = jax.random.normal(key, (2, 4, 16, 16), dtype=jnp.float32)
    out = jax.block_until_ready(unpool(x))
    ref = unpool_ref(x)
    assert out.shape == ref.shape, (out.shape, ref.shape)
    assert jnp.allclose(out, ref), "mismatch vs reference (dense path)"

    # Ragged last row-tile on the dense path (rows % TR != 0).
    y = jax.random.normal(k1, (1, 2, 24, 128), dtype=jnp.float32)
    out_y = jax.block_until_ready(unpool(y, max_block_elems=8 * 256))
    assert jnp.allclose(out_y, unpool_ref(y)), "mismatch vs reference (ragged tile)"

    # hw not a multiple of 128 -> fallback path.
    z = jax.random.normal(k2, (2, 3, 5, 7), dtype=jnp.float32)
    out_z = jax.block_until_ready(unpool(z))
    assert jnp.allclose(out_z, unpool_ref(z)), "mismatch vs reference (fallback)"

    print("KERNEL_OK")
</pallas_src>

<mosaic_0001>
module attributes {stable_mosaic.version = 11 : i64} {
  func.func @_unpool_kernel(%arg0: i32, %arg1: i32, %arg2: memref<1x2x128xf32, #tpu.memory_space<vmem>>, %arg3: memref<1x2x128xf32, #tpu.memory_space<vmem>>, %arg4: memref<1x2x128xf32, #tpu.memory_space<vmem>>) attributes {dimension_semantics = [#tpu.dimension_semantics<parallel>, #tpu.dimension_semantics<parallel>], iteration_bounds = array<i64: 2, 1>, scalar_prefetch = 0 : i64, scratch_operands = 0 : i64, tpu.core_type = #tpu.core_type<tc>, window_params = [{transform_indices = @transform_0, window_bounds = array<i64: 1, 2, 128>}, {transform_indices = @transform_1, window_bounds = array<i64: 1, 2, 128>}, {transform_indices = @transform_2, window_bounds = array<i64: 1, 2, 128>}]} {
    %c0 = arith.constant 0 : index
    %c0_0 = arith.constant 0 : index
    %c0_1 = arith.constant 0 : index
    %0 = vector.load %arg2[%c0, %c0_0, %c0_1] : memref<1x2x128xf32, #tpu.memory_space<vmem>>, vector<1x2x128xf32>
    %c0_2 = arith.constant 0 : index
    %c0_3 = arith.constant 0 : index
    %c0_4 = arith.constant 0 : index
    %1 = vector.load %arg3[%c0_2, %c0_3, %c0_4] : memref<1x2x128xf32, #tpu.memory_space<vmem>>, vector<1x2x128xf32>
    %2 = arith.cmpf oge, %0, %1 : vector<1x2x128xf32>
    %cst = arith.constant 0.000000e+00 : f32
    %3 = vector.broadcast %cst : f32 to vector<1x2x128xf32>
    %4 = arith.select %2, %1, %3 : vector<1x2x128xi1>, vector<1x2x128xf32>
    %c0_5 = arith.constant 0 : index
    %c0_6 = arith.constant 0 : index
    %c0_7 = arith.constant 0 : index
    %5 = vector.load %arg4[%c0_5, %c0_6, %c0_7] : memref<1x2x128xf32, #tpu.memory_space<vmem>>, vector<1x2x128xf32>
    tpu.vector_store %arg4[%c0_5, %c0_6, %c0_7], %4 {strides = array<i32>} : memref<1x2x128xf32, #tpu.memory_space<vmem>>, vector<1x2x128xf32>,
    return
  }
  func.func @transform_0(%arg0: i32, %arg1: i32) -> (i32, i32, i32) {
    %c4_i32 = arith.constant 4 : i32
    %0 = arith.muli %arg0, %c4_i32 : i32
    %c0_i32 = arith.constant 0 : i32
    %c0_i32_0 = arith.constant 0 : i32
    return %0, %arg1, %c0_i32 : i32, i32, i32
  }
  func.func @transform_1(%arg0: i32, %arg1: i32) -> (i32, i32, i32) {
    %c4_i32 = arith.constant 4 : i32
    %0 = arith.muli %arg0, %c4_i32 : i32
    %c1_i32 = arith.constant 1 : i32
    %1 = arith.addi %0, %c1_i32 : i32
    %c0_i32 = arith.constant 0 : i32
    %c0_i32_0 = arith.constant 0 : i32
    return %1, %arg1, %c0_i32 : i32, i32, i32
  }
  func.func @transform_2(%arg0: i32, %arg1: i32) -> (i32, i32, i32) {
    %c0_i32 = arith.constant 0 : i32
    %c0_i32_0 = arith.constant 0 : i32
    return %arg0, %arg1, %c0_i32 : i32, i32, i32
  }
}

</mosaic_0001>

<bundles_post_ra>
// kernel: tpu_custom_call.1
= control target key start
LH: loop header
LB: loop body
LE: loop exit
PB: predicated region body
PF: predicated region fallthrough
CT: control target
= control target key end

     0   :  { %s1017_s0 = inlined_call_operand.hbm [shape: f32[8,2,128], index: 0, kind: input, shape index: {}]   ;;  %s1018_s1 = inlined_call_operand.hbm [shape: f32[8,2,128], index: 1, kind: input, shape index: {}]   ;;  %s1019_s2 = inlined_call_operand.hbm [shape: f32[2,2,128], index: 2, kind: output, shape index: {}]  }
   0x1   :  { %1028 = sst [smem:[#allocation13_spill]] %s1017_s0 }
   0x2   :  { %7 = vsyncpa [#allocation3], 0 }
   0x3   :  { %9 = vsyncpa [#allocation3 + $0x1], 0 }
   0x4   :  { %10 = vsyncpa [#allocation6], 0 }
   0x5   :  { %12 = vsyncpa [#allocation6 + $0x1], 0 }
   0x6   :  { %13 = vsyncpa [#allocation4], 0 }
   0x7   :  { %15 = vsyncpa [#allocation4 + $0x1], 0  ;;  %s709_s9 = smov 0   ;;  %s711_s10 = smov 0  }
   0x8   :  { %s713_s11 = smov 0   ;;  %s715_s12 = smov 0  }
   0x9   :  { %s717_s13 = smov 0   ;;  %s719_s14 = smov 0  }
   0xa   :  { %s721_s15 = smov 0   ;;  %s723_s16 = smov 0  }
   0xb   :  { %s725_s17 = smov 0   ;;  %s727_s18 = smov 0  }
   0xc   :  { %s729_s19 = smov 0   ;;  %s731_s20 = smov 0  }
   0xd LB: > { %s355_s21 = sadd.s32 4294967295, %s689_s20   ;;  %s356_s22 = sadd.s32 4294967294, %s689_s20   ;;  %s689_s20 = sphi %s731_s20, %s21_s20   ;;  %s685_s19 = sphi %s729_s19, %s1065_s19   ;;  %s681_s18 = sphi %s727_s18, %s1064_s18   ;;  %s677_s17 = sphi %s725_s17, %s1063_s17   ;;  %s673_s16 = sphi %s723_s16, %s1062_s16   ;;  %s669_s15 = sphi %s721_s15, %s1061_s15   ;;  %s665_s14 = sphi %s719_s14, %s1060_s14   ;;  %s661_s13 = sphi %s717_s13, %s1059_s13   ;;  %s657_s12 = sphi %s715_s12, %s1058_s12   ;;  %s653_s11 = sphi %s713_s11, %s1057_s11   ;;  %s649_s10 = sphi %s711_s10, %s1056_s10   ;;  %s645_s9 = sphi %s709_s9, %s1055_s9  }
   0xe   : > { %s33_s23 = sadd.s32 1, %s685_s19  ;;  %s357_s24 = sshll.u32 %s685_s19, 2 }
   0xf   : > { %p35_p0 = scmp.ge.s32.totalorder %s33_s23, 2  ;;  %s44_s25 = sadd.s32 1, %s677_s17 }
  0x10   : > { %p51_p1 = scmp.ne.s32.totalorder %s677_s17, %s673_s16  ;;  %p1021_p2 = scmp.eq.s32.totalorder %s689_s20, 0 }
  0x11   : > { %s1067_s23 = smov (%p35_p0, %s33_s23), 0  ;;  %p57_p4 = scmp.ne.s32.totalorder %s673_s16, %s669_s15 }
  0x12   : > { %1029 = sst [smem:[#allocation11_spill]] %s1067_s23  ;;  %p779_p3 = por %p1021_p2, %p51_p1 }
  0x13   : > { %s358_s27 = sshll.u32 %s1067_s23, 2  ;;  %p785_p5 = scmp.eq.s32.totalorder %s355_s21, 0 }
  0x14   : > { %s39_s29 = ssub.s32 %s357_s24, %s358_s27  ;;  %s68_s30 = sadd.s32 1, %s357_s24 }
  0x15   : > { %s1031_s28 = scalar_select %p785_p5, 1, 0 }
  0x16   : > { %p42_p6 = scmp.eq.s32.totalorder %s39_s29, 0  ;;  %p791_p7 = por %p785_p5, %p57_p4 }
  0x17   : > { %s70_s4 = sadd.s32 1, %s358_s27  ;;  %s99_s5 = ssub.s32 %s685_s19, %s1067_s23 }
  0x18   : > { %s1032_s3 = scalar_select %p791_p7, 1, 0 }
  0x19   : > { %s798_s6 = scalar_select %p42_p6, %s677_s17, %s44_s25  }
  0x1a   : > { %s71_s7 = ssub.s32 %s68_s30, %s70_s4  ;;  %p102_p8 = scmp.eq.s32.totalorder %s99_s5, 0 }
  0x1b   : > { %1033 = sst [smem:[#allocation12_spill]] %s798_s6  ;;  %p800_p9 = scmp.eq.s32.totalorder %s71_s7, 0 }
  0x1c   : > { %s104_s15 = sadd.s32 1, %s653_s11  ;;  %p114_p10 = scmp.ne.s32.totalorder %s653_s11, %s649_s10 }
  0x1d   : > { %s806_s24 = scalar_select %p102_p8, %s653_s11, %s104_s15  }
  0x1e   : > { %p115_p11 = scmp.eq.s32.totalorder %s355_s21, 1  ;;  %p120_p12 = scmp.ne.s32.totalorder %s649_s10, %s645_s9 }
  0x1f   : > { %p121_p13 = scmp.eq.s32.totalorder %s356_s22, 1  ;;  %p1023_p6 = scmp.lt.s32.totalorder %s689_s20, 2 }
  0x20   : > { %p812_p0 = por %p115_p11, %p114_p10  ;;  %s141_s29 = sand.u32 1, %s677_s17  }
  0x21   : > { %p817_p4 = por %p121_p13, %p120_p12  ;;  %s1022_s30 = sshll.u32 %s685_s19, 7 }
  0x22   : > { %s1035_s25 = scalar_select %p812_p0, 1, 0 }
  0x23   : > { %s1036_s27 = scalar_select %p817_p4, 1, 0 }
  0x24   : > { %s363_s4 = sshll.u32 %s141_s29, 1  ;;  %s1037_s0 = sld [smem:[#allocation13_spill]] }
  0x25   : > { %s145_s22 = scalar_lea.vmem [#allocation2], %s363_s4  ;;  %p835_p8 = pnand %p1023_p6, %p779_p3 }
  0x26   : > { %s154_s15 = sshll.u32 %s145_s22, 4  ;;  %s142_s5 = scalar_lea.sflag [#allocation3], %s141_s29  ;;  %s839_s15 = int_to_ptr.vmem [resolvable:$true] %s154_s15 }
  0x27   : > { %p496_p13 = pneg %p835_p8 }
  0x2a   : > { %s829_s21 = scalar_lea.hbm %s1037_s0, %s1022_s30  ;;  %s499_s22 = scalar_lea.hbm %s1037_s0, 256 }
  0x2b   : > { %s494_s7 = scalar_lea.hbm %s829_s21, 32  ;;  %p500_p3 = scmp.lt.u32.totalorder %s829_s21, %s1037_s0 }
  0x2c   : > { %p495_p12 = scmp.ne.s32.totalorder %s829_s21, %s494_s7  ;;  %p501_p6 = scmp.lt.u32.totalorder %s499_s22, %s494_s7 }
  0x2d   : > { %p503_p11 = scmp.lt.u32.totalorder %s494_s7, %s829_s21 }
  0x2e   : > { %p497_p1 = pnand %p496_p13, %p495_p12  ;;  %p502_p10 = por %p501_p6, %p500_p3 }
  0x30   : > { %p498_p2 = pneg %p497_p1  ;;  %p504_p4 = por %p503_p11, %p502_p10 }
  0x32   : > { %p505_p0 = pnand %p504_p4, %p498_p2 }
  0x34   : > { %508 = shalt.err (!%p505_p0)
}
  0x35   : > { %s509_s29 = scalar_lea.vmem %s839_s15, 32  ;;  %s691_s26 = smov [#allocation2]  }
  0x36   : > { %p510_p1 = scmp.ne.s32.totalorder %s839_s15, %s509_s29  ;;  %s514_s4 = sshll.u32 %s691_s26, 4  ;;  %s515_s4 = int_to_ptr.vmem [resolvable:$false] %s514_s4 }
  0x37   : > { %s516_s6 = scalar_lea.vmem %s515_s4, 64  ;;  %p517_p5 = scmp.lt.s32.totalorder %s839_s15, %s515_s4 }
  0x38   : > { %p512_p12 = pnand %p510_p1, %p496_p13  ;;  %p518_p6 = scmp.lt.s32.totalorder %s516_s6, %s509_s29 }
  0x3a   : > { %p513_p7 = pneg %p512_p12  ;;  %p519_p3 = por %p518_p6, %p517_p5 }
  0x3c   : > { %p520_p10 = pnand %p519_p3, %p513_p7 }
  0x3e   : > { %523 = shalt.err (!%p520_p10)
}
  0x3f   : > { %388 = dma.hbm_to_vmem [thread:$0]  (!%p835_p8), %s829_s21, 32, %s839_s15, %s142_s5  }
  0x40   : > { %p1039_p2 = scmp.lt.s32.totalorder %s689_s20, 3  ;;  %p1040_p5 = scmp.ge.s32.totalorder %s689_s20, 1 }
  0x41   : > { %s76_s30 = sadd.s32 1, %s665_s14  ;;  %p83_p0 = scmp.ne.s32.totalorder %s665_s14, %s661_s13 }
  0x42   : > { %p872_p7 = pnand %p1040_p5, %p1039_p2  ;;  %p89_p4 = scmp.ne.s32.totalorder %s661_s13, %s657_s12 }
  0x43   : > { %s880_s7 = scalar_select %p800_p9, %s665_s14, %s76_s30  }
  0x44   : > { %s161_s22 = sand.u32 1, %s665_s14   ;;  %s1042_s29 = sshll.u32 %s685_s19, 7 }
  0x45   : > { %s288_s6 = scalar_lea.hbm %s1018_s1, %s1042_s29  ;;  %p1043_p11 = scmp.eq.s32.totalorder %s689_s20, 0 }
  0x46   : > { %p1044_p13 = scmp.ne.s32.totalorder %s1031_s28, 0  ;;  %s366_s15 = sshll.u32 %s161_s22, 1 }
  0x47   : > { %p85_p8 = por %p83_p0, %p1043_p11  ;;  %s900_s5 = scalar_lea.hbm %s288_s6, 32 }
  0x48   : > { %p896_p1 = por %p89_p4, %p1044_p13  ;;  %s165_s12 = scalar_lea.vmem [#allocation5], %s366_s15 }
  0x49   : > { %s175_s8 = sshll.u32 %s165_s12, 4  ;;  %p1046_p9 = scmp.lt.s32.totalorder %s689_s20, 2  ;;  %s908_s8 = int_to_ptr.vmem [resolvable:$true] %s175_s8 }
  0x4a   : > { %s1045_s21 = scalar_select %p896_p1, 1, 0 }
  0x4b   : > { %p904_p12 = pnand %p1046_p9, %p85_p8  ;;  %s162_s28 = scalar_lea.sflag [#allocation6], %s161_s22 }
  0x4c   : > { %s554_s29 = scalar_lea.hbm %s288_s6, 64  ;;  %s529_s15 = scalar_lea.hbm %s1018_s1, 256 }
  0x4d   : > { %p525_p6 = scmp.ne.s32.totalorder %s900_s5, %s554_s29  ;;  %p526_p3 = pneg %p904_p12 }
  0x4e   : > { %p530_p5 = scmp.lt.u32.totalorder %s900_s5, %s1018_s1  ;;  %p531_p0 = scmp.lt.u32.totalorder %s529_s15, %s554_s29 }
  0x4f   : > { %p527_p10 = pnand %p526_p3, %p525_p6  ;;  %p533_p11 = scmp.lt.u32.totalorder %s554_s29, %s900_s5 }
  0x50   : > { %p532_p4 = por %p531_p0, %p530_p5 }
  0x51   : > { %p528_p2 = pneg %p527_p10 }
  0x52   : > { %p534_p8 = por %p533_p11, %p532_p4 }
  0x54   : > { %p535_p13 = pnand %p534_p8, %p528_p2 }
  0x56   : > { %538 = shalt.err (!%p535_p13)
}
  0x57   : > { %s539_s22 = scalar_lea.vmem %s908_s8, 32  ;;  %s692_s6 = smov [#allocation5]  }
  0x58   : > { %p540_p9 = scmp.ne.s32.totalorder %s908_s8, %s539_s22  ;;  %s544_s26 = sshll.u32 %s692_s6, 4  ;;  %s545_s26 = int_to_ptr.vmem [resolvable:$false] %s544_s26 }
  0x59   : > { %s546_s0 = scalar_lea.vmem %s545_s26, 64  ;;  %p547_p1 = scmp.lt.s32.totalorder %s908_s8, %s545_s26 }
  0x5a   : > { %p542_p6 = pnand %p540_p9, %p526_p3  ;;  %p548_p5 = scmp.lt.s32.totalorder %s546_s0, %s539_s22 }
  0x5c   : > { %p543_p10 = pneg %p542_p6  ;;  %p549_p0 = por %p548_p5, %p547_p1 }
  0x5e   : > { %p550_p4 = pnand %p549_p0, %p543_p10 }
  0x60   : > { %553 = shalt.err (!%p550_p4)
}
  0x61   : > { %391 = dma.hbm_to_vmem [thread:$0]  (!%p904_p12), %s900_s5, 32, %s908_s8, %s162_s28  }
  0x62   : > { %184 = sbr.rel (%p872_p7) target bundleno = 136 (0x88), region = 28  ;;  %s186_s29 = sand.u32 (!%p872_p7), 1, %s673_s16  }
  0x63   : > { %s370_s4 = sshll.u32 (!%p872_p7), %s186_s29, 1  ;;  %s187_s15 = scalar_lea.sflag (!%p872_p7), [#allocation3], %s186_s29 }
  0x64   : > { %s190_s12 = scalar_lea.vmem (!%p872_p7), [#allocation2], %s370_s4  ;;  %p1048_p3 = scmp.ne.s32.totalorder (!%p872_p7), %s1032_s3, 0 }
  0x69   : > { %632 = dma.done.wait (%p1048_p3), %s187_s15, 32  }
  0x6a   : > { %634 = vsyncadd (%p1048_p3), %s187_s15, 4294967264  ;;  %s195_s30 = sand.u32 1, %s661_s13   ;;  %p1049_p1 = scmp.ne.s32.totalorder %s1045_s21, 0 }
  0x6b   : > { %s371_s22 = sshll.u32 %s195_s30, 1  ;;  %s196_s6 = scalar_lea.sflag [#allocation6], %s195_s30 }
  0x6c   : > { %s199_s5 = scalar_lea.vmem [#allocation5], %s371_s22 }
  0x6d   : > { %636 = dma.done.wait (%p1049_p1), %s196_s6, 32  }
  0x6e   : > { %638 = vsyncadd (%p1049_p1), %s196_s6, 4294967264  ;;  %s222_s23 = sand.u32 1, %s649_s10   ;;  %s374_s3 = sshll.u32 %s681_s18, 5  ;;  %v228_v0 = vld [vmem:[%s190_s12] sm:$0x3] }
  0x6f   : > { %s372_s8 = sshll.u32 %s222_s23, 1  ;;  %v229_v1 = vld [vmem:[%s199_s5] sm:$0x3]  ;;  %s953_s21 = scalar_lea.hbm %s1019_s2, %s374_s3 }
  0x70   : > { %s224_s28 = scalar_lea.vmem [#allocation7], %s372_s8  ;;  %vm230_vm0 = vcmp.ge.f32.partialorder %v228_v0, %v229_v1  ;;  %s234_s4 = scalar_lea.sflag [#allocation4], %s222_s23 }
  0x71   : > { %s248_s26 = sshll.u32 %s224_s28, 4  ;;  %v231_v2 = vsel %vm230_vm0, %v229_v1, 0.0  ;;  %p1050_p12 = scmp.ne.s32.totalorder %s1035_s25, 0  ;;  %s948_s26 = int_to_ptr.vmem [resolvable:$true] %s248_s26 }
  0x72   : > { %232 = vst [vmem:[%s224_s28] sm:$0x3] %v231_v2  ;;  %s555_s15 = scalar_lea.vmem %s948_s26, 32  ;;  %s693_s18 = smov [#allocation7]  }
  0x73   : > { %p556_p7 = scmp.ne.s32.totalorder %s948_s26, %s555_s15  ;;  %s559_s12 = sshll.u32 %s693_s18, 4  ;;  %s560_s12 = int_to_ptr.vmem [resolvable:$false] %s559_s12 }
  0x74   : > { %s561_s30 = scalar_lea.vmem %s560_s12, 64  ;;  %p562_p8 = scmp.lt.s32.totalorder %s948_s26, %s560_s12 }
  0x75   : > { %p557_p2 = pnand %p556_p7, %p1050_p12  ;;  %p563_p13 = scmp.lt.s32.totalorder %s561_s30, %s555_s15 }
  0x77   : > { %p558_p11 = pneg %p557_p2  ;;  %p564_p9 = por %p563_p13, %p562_p8 }
  0x79   : > { %p565_p6 = pnand %p564_p9, %p558_p11 }
  0x7b   : > { %568 = shalt.err (!%p565_p6)
}
  0x7c   : > { %s569_s22 = scalar_lea.hbm %s953_s21, 32  ;;  %s573_s23 = scalar_lea.hbm %s1019_s2, 64 }
  0x7d   : > { %p570_p10 = scmp.ne.s32.totalorder %s953_s21, %s569_s22  ;;  %p574_p4 = scmp.lt.u32.totalorder %s953_s21, %s1019_s2 }
  0x7e   : > { %p575_p3 = scmp.lt.u32.totalorder %s573_s23, %s569_s22  ;;  %p577_p7 = scmp.lt.u32.totalorder %s569_s22, %s953_s21 }
  0x7f   : > { %p571_p5 = pnand %p570_p10, %p1050_p12 }
  0x80   : > { %p576_p1 = por %p575_p3, %p574_p4 }
  0x81   : > { %p572_p0 = pneg %p571_p5 }
  0x82   : > { %p578_p2 = por %p577_p7, %p576_p1 }
  0x84   : > { %p579_p11 = pnand %p578_p2, %p572_p0 }
  0x86   : > { %582 = shalt.err (!%p579_p11)
}
  0x87   : > { %383 = dma.vmem_to_hbm [thread:$0]  (%p1050_p12), %s948_s26, 32, %s953_s21, %s234_s4  }
  0x88 PF: > { %s260_s3 = sand.u32 1, %s645_s9   ;;  %p1051_p8 = scmp.ne.s32.totalorder %s1036_s27, 0 }
  0x89   : > { %p1052_p13 = scmp.ge.s32.totalorder %s689_s20, 2  ;;  %s261_s0 = scalar_lea.sflag [#allocation4], %s260_s3 }
  0x8b   : > { %p393_p9 = pnand %p1052_p13, %p1051_p8 }
  0x8d   : > { %640 = dma.done.wait (!%p393_p9), %s261_s0, 32  }
  0x8e   : > { %642 = vsyncadd (!%p393_p9), %s261_s0, 4294967264  ;;  %s21_s20 = sadd.s32 1, %s689_s20   ;;  %s1053_s25 = sld [smem:[#allocation12_spill]] }
  0x8f   : > { %p18_p6 = scmp.ge.s32.totalorder %s21_s20, 4   ;;  %s1054_s26 = sld [smem:[#allocation11_spill]] }
  0x90   : > { %s1055_s9 = smov %s649_s10  ;;  %s1056_s10 = smov %s653_s11 }
  0x91   : > { %s1057_s11 = smov %s806_s24  ;;  %s1058_s12 = smov %s661_s13 }
  0x92   : > { %s1059_s13 = smov %s665_s14  ;;  %s1060_s14 = smov %s880_s7 }
  0x93   : > { %s1061_s15 = smov %s673_s16  ;;  %s1062_s16 = smov %s677_s17 }
  0x94   : > { %s1063_s17 = smov %s1053_s25  ;;  %s1064_s18 = smov %s685_s19 }
  0x95   : > { %s1065_s19 = smov %s1054_s26  ;;  %20 = sbr.rel (!%p18_p6) target bundleno = 13 (0xd), region = 86 }
  0x9c   :  { %266 = vsyncpa [#allocation3], 1 }
  0x9d   :  { %268 = vsyncpa [#allocation3 + $0x1], 1 }
  0x9e   :  { %269 = vsyncpa [#allocation6], 1 }
  0x9f   :  { %271 = vsyncpa [#allocation6 + $0x1], 1 }
  0xa0   :  { %272 = vsyncpa [#allocation4], 1 }
  0xa1   :  { %274 = vsyncpa [#allocation4 + $0x1], 1 }

</bundles_post_ra>
